<compile_context>
chip_gen: v7x
topology: tpu7x:2x2x1
jax: 0.10.0
libtpu: 0.0.40
codegen_flags: <defaults>
</compile_context>

<pallas_src>
import numpy as np
import jax
import jax.numpy as jnp
from jax.experimental import pallas as pl
from jax.experimental.pallas import tpu as pltpu

EPS = 1e-5     # nn.BatchNorm2d default eps
LANE = 128     # TPU lane width
SUB = 8        # TPU sublane width


def _round_up(x, m):
    return (x + m - 1) // m * m


# ----------------------------------------------------------------------------
# Pallas kernel: whole encoder fused; one grid step = one chunk of Tc frames
# ----------------------------------------------------------------------------
def _make_encoder_kernel(L, P, R, alphas):
    """Refs (in order):
         x_ref         VMEM (M, P)       chunk of layer-0 frames, (ci,f) flat, zero padded
         cache_ref     VMEM (L, R, P)    user caches (read only at grid step 0)
         w_ref         VMEM (2P, L*P)    all layers' merged [prev;cur] conv+BN weights
         b_ref         VMEM (1, L*P)     all layers' folded biases
         out_ref       VMEM (M, L*P)     packed per-layer outputs for this chunk
         cache_out_ref VMEM (L, R, P)    last frame of every layer's input (next caches)
         carry_ref     VMEM (L, R, P)    scratch: per-layer cache carried across chunks
       M = Tc * R rows (frame-major, batch padded to R=8 rows per frame).
       PReLU slopes are fixed inference parameters -> baked as immediates (no SMEM DMA)."""
    def kernel(x_ref, cache_ref, w_ref, b_ref, out_ref, cache_out_ref, carry_ref):
        @pl.when(pl.program_id(0) == 0)
        def _init():                                  # seed the carry from the user caches
            carry_ref[...] = cache_ref[...]

        cur = x_ref[...]                              # (M, P) this layer's chunk input
        outs = []
        for i in range(L):
            # frame t-1 rows: previous chunk's last frame for t=0, in-chunk shift otherwise
            prev = jnp.concatenate([carry_ref[i], cur[:-R]], axis=0)      # 8-aligned concat
            last = cur[-R:]                           # last frame of this layer's input
            carry_ref[i] = last                       # carry to the next grid step
            cache_out_ref[i] = last                   # exported next-chunk cache

            inp = jnp.concatenate([prev, cur], axis=1)                    # (M, 2P)
            y = jnp.dot(inp, w_ref[:, i * P:(i + 1) * P],                 # one MXU matmul
                        preferred_element_type=jnp.float32)
            y = y + b_ref[:, i * P:(i + 1) * P]
            y = jnp.where(y > 0.0, y, alphas[i] * y)                      # shared-slope PReLU
            outs.append(y)
            cur = y                                   # stays in VMEM / vregs
        out_ref[...] = jnp.concatenate(outs, axis=1)  # one lane-dense (M, L*P) store
    return kernel


def fused_encoder_call(x_pad, cache_pad, prep, R, Tc):
    P, L = prep["P"], prep["L"]
    rows = x_pad.shape[0]                 # T * R
    M = Tc * R
    n_chunks = rows // M
    kernel = _make_encoder_kernel(L, P, R, [li["alpha"] for li in prep["layers"]])
    return pl.pallas_call(
        kernel,
        grid=(n_chunks,),
        in_specs=[
            pl.BlockSpec((M, P), lambda c: (c, 0)),              # streamed frame chunk
            pl.BlockSpec((L, R, P), lambda c: (0, 0, 0)),        # initial caches (resident)
            pl.BlockSpec((2 * P, L * P), lambda c: (0, 0)),      # weight slab (resident)
            pl.BlockSpec((1, L * P), lambda c: (0, 0)),          # bias slab (resident)
        ],
        out_specs=[
            pl.BlockSpec((M, L * P), lambda c: (c, 0)),          # packed layer outputs
            pl.BlockSpec((L, R, P), lambda c: (0, 0, 0)),        # next-chunk caches
        ],
        out_shape=[
            jax.ShapeDtypeStruct((rows, L * P), jnp.float32),
            jax.ShapeDtypeStruct((L, R, P), jnp.float32),
        ],
        scratch_shapes=[pltpu.VMEM((L, R, P), jnp.float32)],
        compiler_params=pltpu.CompilerParams(
            dimension_semantics=("arbitrary",)),                 # cache carry -> sequential
    )(x_pad, cache_pad, prep["W"], prep["b"])


# ----------------------------------------------------------------------------
# One-time parameter preprocessing (NOT per forward): fold BN, pack weight slabs
# ----------------------------------------------------------------------------
def prepare_params(params, F0):
    """Fold BatchNorm (eval mode) into the conv weight/bias, lower each streaming conv
    (kT == 2) to a dense matmul on the flattened [prev-frame ; current-frame] input with
    every per-frame activation zero-padded to a common P (multiple of 128) lane width,
    and pack all layers into ONE weight slab + ONE bias slab.  Done once, in numpy."""
    L = len(params)
    dims = []
    F_in = F0
    for p in params:
        assert p["kT"] == 2, "streaming shift-by-one-frame carry assumes kT == 2"
        F_out = (F_in + 2 * p["padW"] - p["kW"]) // p["sW"] + 1
        dims.append((F_in, F_out))
        F_in = F_out
    widths = [params[0]["Cin"] * F0] + [p["Cout"] * d[1] for p, d in zip(params, dims)]
    P = _round_up(max(widths), LANE)                 # common padded per-frame lane width

    W_slab = np.zeros((2 * P, L * P), np.float32)
    b_slab = np.zeros((1, L * P), np.float32)
    layers = []
    for i, (p, (F_in, F_out)) in enumerate(zip(params, dims)):
        kT, kW, sW, padW = p["kT"], p["kW"], p["sW"], p["padW"]
        Cin, Cout = p["Cin"], p["Cout"]

        gamma = np.asarray(p["gamma"], np.float32)
        var = np.asarray(p["var"], np.float32)
        scale = gamma / np.sqrt(var + EPS)
        w_f = np.asarray(p["w"], np.float32) * scale[:, None, None, None]  # (Cout,Cin,kT,kW)
        b_f = (np.asarray(p["b"], np.float32) * scale
               + np.asarray(p["beta"], np.float32)
               - np.asarray(p["mean"], np.float32) * scale)                # (Cout,)

        # S[kw, fo, f] = 1 iff input freq f feeds output freq fo through tap kw
        # (zero padding handled by omitting out-of-range taps).
        S = np.zeros((kW, F_out, F_in), np.float32)
        for kw in range(kW):
            for fo in range(F_out):
                f = fo * sW + kw - padW
                if 0 <= f < F_in:
                    S[kw, fo, f] = 1.0
        # W3[t, (ci,f), (co,fo)] = w_f[co,ci,t,kw] * S[kw,fo,f]
        W3 = np.einsum("oitk,kqf->tifoq", w_f, S).reshape(kT, Cin * F_in, Cout * F_out)

        col = i * P
        W_slab[0:Cin * F_in,     col:col + Cout * F_out] = W3[0]   # prev-frame (cache) taps
        W_slab[P:P + Cin * F_in, col:col + Cout * F_out] = W3[1]   # current-frame taps
        b_slab[0, col:col + Cout * F_out] = np.repeat(b_f, F_out)

        layers.append(dict(Cin=Cin, Cout=Cout, F_in=F_in, F_out=F_out,
                           in_width=Cin * F_in, out_width=Cout * F_out,
                           alpha=float(p["alpha"])))
    return dict(W=jnp.asarray(W_slab), b=jnp.asarray(b_slab), P=P, L=L, layers=layers)


# ----------------------------------------------------------------------------
# Wrapper: StreamEncoder.forward applied to a chunk of T streaming frames
# ----------------------------------------------------------------------------
def stream_encoder_forward(x, en_caches, prep, Tc=8):
    """x: (B, Cin, T, F0) — T streaming frames processed in one fused pallas_call.
    en_caches[i]: (B, Cin_i, 1, F_in_i).  Returns (x_last, en_outs, new_caches) with
    en_outs[i]: (B, Cout_i, T, F_out_i), mirroring T calls of StreamEncoder.forward."""
    B, Cin, T, F0 = x.shape
    P, L = prep["P"], prep["L"]
    R = _round_up(B, SUB)                      # rows per frame (batch padded to sublane)
    assert T % Tc == 0, "chunk length Tc must divide the number of frames T"

    # (B,Cin,T,F0) -> frame-major rows (t, b), (ci,f) flattened, padded to (R, P) per frame
    x_rows = jnp.transpose(x, (2, 0, 1, 3)).reshape(T, B, Cin * F0)
    x_pad = jnp.pad(x_rows, ((0, 0), (0, R - B), (0, P - Cin * F0))).reshape(T * R, P)

    cache_pad = jnp.zeros((L, R, P), jnp.float32)
    for i, li in enumerate(prep["layers"]):
        c = en_caches[i].reshape(B, li["in_width"])
        cache_pad = cache_pad.at[i, :B, :li["in_width"]].set(c)

    out_slab, cache_out = fused_encoder_call(x_pad, cache_pad, prep, R, Tc)

    out3 = out_slab.reshape(T, R, L * P)
    en_outs, new_caches = [], []
    for i, li in enumerate(prep["layers"]):
        y = out3[:, :B, i * P: i * P + li["out_width"]]
        y = y.reshape(T, B, li["Cout"], li["F_out"]).transpose(1, 2, 0, 3)   # (B,C,T,F)
        en_outs.append(y)
        nc = cache_out[i, :B, :li["in_width"]].reshape(B, li["Cin"], 1, li["F_in"])
        new_caches.append(nc)
    return en_outs[-1], en_outs, new_caches


# ----------------------------------------------------------------------------
# Pure-JAX single-frame reference (for correctness check)
# ----------------------------------------------------------------------------
def reference_forward(x, en_caches, params):
    en_outs, new_caches = [], []
    for i, p in enumerate(params):
        inp = jnp.concatenate([en_caches[i], x], axis=2)
        new_caches.append(inp[:, :, 1:, :])
        out = jax.lax.conv_general_dilated(
            inp, p["w"], window_strides=(1, p["sW"]),
            padding=((0, 0), (p["padW"], p["padW"])),
            dimension_numbers=("NCHW", "OIHW", "NCHW"),
            precision=jax.lax.Precision.HIGHEST)
        out = out + p["b"][None, :, None, None]
        scale = p["gamma"] / jnp.sqrt(p["var"] + EPS)
        out = (out - p["mean"][None, :, None, None]) * scale[None, :, None, None] \
              + p["beta"][None, :, None, None]
        out = jnp.where(out > 0, out, p["alpha"] * out)
        en_outs.append(out)
        x = out
    return x, en_outs, new_caches


# ----------------------------------------------------------------------------
# Deterministic parameter init (shapes follow StreamEncoder.__init__)
# ----------------------------------------------------------------------------
def init_params(key, in_channels, filter_size, kernel_size, stride_size):
    params = []
    Cin = in_channels
    for i, Cout in enumerate(filter_size):
        kT, kW = kernel_size[i]
        _, sW = stride_size[i]
        key, k1, k2, k3, k4, k5, k6 = jax.random.split(key, 7)
        params.append(dict(
            w=0.2 * jax.random.normal(k1, (Cout, Cin, kT, kW), jnp.float32),
            b=0.1 * jax.random.normal(k2, (Cout,), jnp.float32),
            gamma=1.0 + 0.1 * jax.random.normal(k3, (Cout,), jnp.float32),
            beta=0.1 * jax.random.normal(k4, (Cout,), jnp.float32),
            mean=0.1 * jax.random.normal(k5, (Cout,), jnp.float32),
            var=0.5 + jnp.abs(jax.random.normal(k6, (Cout,), jnp.float32)) * 0.5,
            alpha=jnp.float32(0.25),                    # nn.PReLU() default init
            kT=kT, kW=kW, sW=sW, padW=(kW - 1) // 2, Cin=Cin, Cout=Cout))
        Cin = Cout
    return params


if __name__ == "__main__":
    B, in_channels, F0 = 2, 2, 16
    T, Tc = 32, 8                                    # 32 streaming frames, 4 grid chunks
    filter_size = [8, 16, 32]
    kernel_size = [(2, 5), (2, 3), (2, 3)]
    stride_size = [(1, 2), (1, 2), (1, 1)]

    key = jax.random.PRNGKey(0)
    key, kp, kx, kc = jax.random.split(key, 4)
    params = init_params(kp, in_channels, filter_size, kernel_size, stride_size)

    x = jax.random.normal(kx, (B, in_channels, T, F0), jnp.float32)

    # Per-layer streaming caches (B, Cin_i, kT-1, F_in_i)
    caches = []
    Fi, Ci = F0, in_channels
    ckeys = jax.random.split(kc, len(params))
    for i, p in enumerate(params):
        caches.append(jax.random.normal(ckeys[i], (B, Ci, p["kT"] - 1, Fi), jnp.float32))
        Fi = (Fi + 2 * p["padW"] - p["kW"]) // p["sW"] + 1
        Ci = p["Cout"]

    # One-time parameter preprocessing, then the fused chunked forward.
    prep = prepare_params(params, F0)
    out, en_outs, new_caches = stream_encoder_forward(x, caches, prep, Tc=Tc)
    jax.block_until_ready(out)

    # Reference: run the per-frame pure-JAX StreamEncoder T times (streaming loop).
    ref_caches = list(caches)
    ref_outs = [[] for _ in params]
    for t in range(T):
        xt = x[:, :, t:t + 1, :]
        _, outs_t, ref_caches = reference_forward(xt, ref_caches, params)
        for i, o in enumerate(outs_t):
            ref_outs[i].append(o)
    ref_outs = [jnp.concatenate(o, axis=2) for o in ref_outs]          # (B, C, T, F)

    for got, ref in zip(en_outs, ref_outs):
        assert got.shape == ref.shape
        assert jnp.allclose(got, ref, atol=1e-2, rtol=1e-2), \
            float(jnp.max(jnp.abs(got - ref)))
    assert jnp.allclose(out, ref_outs[-1], atol=1e-2, rtol=1e-2)
    for got, ref in zip(new_caches, ref_caches):
        assert got.shape == ref.shape
        assert jnp.allclose(got, ref, atol=1e-2, rtol=1e-2)

    print("KERNEL_OK")
</pallas_src>

<mosaic_0001>
module attributes {stable_mosaic.version = 11 : i64} {
  func.func @kernel(%arg0: i32, %arg1: memref<64x128xf32, #tpu.memory_space<vmem>>, %arg2: memref<3x8x128xf32, #tpu.memory_space<vmem>>, %arg3: memref<256x384xf32, #tpu.memory_space<vmem>>, %arg4: memref<1x384xf32, #tpu.memory_space<vmem>>, %arg5: memref<64x384xf32, #tpu.memory_space<vmem>>, %arg6: memref<3x8x128xf32, #tpu.memory_space<vmem>>, %arg7: memref<3x8x128xf32, #tpu.memory_space<vmem>>) attributes {dimension_semantics = [#tpu.dimension_semantics<arbitrary>], iteration_bounds = array<i64: 4>, scalar_prefetch = 0 : i64, scratch_operands = 1 : i64, tpu.core_type = #tpu.core_type<tc>, window_params = [{transform_indices = @transform_0, window_bounds = array<i64: 64, 128>}, {pipeline_mode = #tpu.pipeline_mode<synchronous>, transform_indices = @transform_1, window_bounds = array<i64: 3, 8, 128>}, {pipeline_mode = #tpu.pipeline_mode<synchronous>, transform_indices = @transform_2, window_bounds = array<i64: 256, 384>}, {pipeline_mode = #tpu.pipeline_mode<synchronous>, transform_indices = @transform_3, window_bounds = array<i64: 1, 384>}, {transform_indices = @transform_4, window_bounds = array<i64: 64, 384>}, {pipeline_mode = #tpu.pipeline_mode<synchronous>, transform_indices = @transform_5, window_bounds = array<i64: 3, 8, 128>}]} {
    %c0_i32 = arith.constant 0 : i32
    %0 = arith.cmpi eq, %arg0, %c0_i32 : i32
    %1 = arith.extui %0 : i1 to i32
    %c0_i32_0 = arith.constant 0 : i32
    %2 = arith.cmpi ne, %1, %c0_i32_0 : i32
    scf.if %2 {
      %c0_47 = arith.constant 0 : index
      %c0_48 = arith.constant 0 : index
      %c0_49 = arith.constant 0 : index
      %72 = vector.load %arg2[%c0_47, %c0_48, %c0_49] : memref<3x8x128xf32, #tpu.memory_space<vmem>>, vector<3x8x128xf32>
      %c0_50 = arith.constant 0 : index
      %c0_51 = arith.constant 0 : index
      %c0_52 = arith.constant 0 : index
      %73 = vector.load %arg7[%c0_50, %c0_51, %c0_52] : memref<3x8x128xf32, #tpu.memory_space<vmem>>, vector<3x8x128xf32>
      tpu.vector_store %arg7[%c0_50, %c0_51, %c0_52], %72 {strides = array<i32>} : memref<3x8x128xf32, #tpu.memory_space<vmem>>, vector<3x8x128xf32>,
    } else {
    }
    %c0 = arith.constant 0 : index
    %c0_1 = arith.constant 0 : index
    %3 = vector.load %arg1[%c0, %c0_1] : memref<64x128xf32, #tpu.memory_space<vmem>>, vector<64x128xf32>
    %c0_2 = arith.constant 0 : index
    %c0_3 = arith.constant 0 : index
    %c0_4 = arith.constant 0 : index
    %4 = vector.load %arg7[%c0_2, %c0_3, %c0_4] : memref<3x8x128xf32, #tpu.memory_space<vmem>>, vector<1x8x128xf32>
    %5 = vector.shape_cast %4 : vector<1x8x128xf32> to vector<8x128xf32>
    %6 = vector.extract_strided_slice %3 {offsets = [0, 0], sizes = [56, 128], strides = [1, 1]} : vector<64x128xf32> to vector<56x128xf32>
    %7 = tpu.concatenate %5, %6 in 0 : vector<8x128xf32>, vector<56x128xf32> -> vector<64x128xf32>
    %8 = vector.extract_strided_slice %3 {offsets = [56, 0], sizes = [8, 128], strides = [1, 1]} : vector<64x128xf32> to vector<8x128xf32>
    %c0_5 = arith.constant 0 : index
    %c0_6 = arith.constant 0 : index
    %c0_7 = arith.constant 0 : index
    %9 = vector.load %arg7[%c0_5, %c0_6, %c0_7] : memref<3x8x128xf32, #tpu.memory_space<vmem>>, vector<1x8x128xf32>
    %10 = vector.shape_cast %9 : vector<1x8x128xf32> to vector<8x128xf32>
    %11 = vector.shape_cast %8 : vector<8x128xf32> to vector<1x8x128xf32>
    tpu.vector_store %arg7[%c0_5, %c0_6, %c0_7], %11 {strides = array<i32>} : memref<3x8x128xf32, #tpu.memory_space<vmem>>, vector<1x8x128xf32>,
    %c0_8 = arith.constant 0 : index
    %c0_9 = arith.constant 0 : index
    %c0_10 = arith.constant 0 : index
    %12 = vector.load %arg6[%c0_8, %c0_9, %c0_10] : memref<3x8x128xf32, #tpu.memory_space<vmem>>, vector<1x8x128xf32>
    %13 = vector.shape_cast %12 : vector<1x8x128xf32> to vector<8x128xf32>
    %14 = vector.shape_cast %8 : vector<8x128xf32> to vector<1x8x128xf32>
    tpu.vector_store %arg6[%c0_8, %c0_9, %c0_10], %14 {strides = array<i32>} : memref<3x8x128xf32, #tpu.memory_space<vmem>>, vector<1x8x128xf32>,
    %15 = tpu.concatenate %7, %3 in 1 : vector<64x128xf32>, vector<64x128xf32> -> vector<64x256xf32>
    %c0_11 = arith.constant 0 : index
    %c0_12 = arith.constant 0 : index
    %16 = vector.load %arg3[%c0_11, %c0_12] : memref<256x384xf32, #tpu.memory_space<vmem>>, vector<256x128xf32>
    %cst = arith.constant dense<0.000000e+00> : vector<64x128xf32>
    %17 = tpu.matmul %15, %16, %cst {dimension_numbers = #tpu.dot_dimension_numbers<[1], [0], [0], [1], [0, 0, 1, 1], [], []>} : vector<64x256xf32>, vector<256x128xf32>, vector<64x128xf32> -> vector<64x128xf32>
    %c0_13 = arith.constant 0 : index
    %c0_14 = arith.constant 0 : index
    %18 = vector.load %arg4[%c0_13, %c0_14] : memref<1x384xf32, #tpu.memory_space<vmem>>, vector<1x128xf32>
    %19 = vector.broadcast %18 : vector<1x128xf32> to vector<64x128xf32>
    %20 = arith.addf %17, %19 : vector<64x128xf32>
    %cst_15 = arith.constant 0.000000e+00 : f32
    %21 = vector.broadcast %cst_15 : f32 to vector<64x128xf32>
    %22 = arith.cmpf ogt, %20, %21 : vector<64x128xf32>
    %cst_16 = arith.constant 2.500000e-01 : f32
    %23 = vector.broadcast %cst_16 : f32 to vector<64x128xf32>
    %24 = arith.mulf %23, %20 : vector<64x128xf32>
    %25 = arith.select %22, %20, %24 : vector<64x128xi1>, vector<64x128xf32>
    %c1 = arith.constant 1 : index
    %c0_17 = arith.constant 0 : index
    %c0_18 = arith.constant 0 : index
    %26 = vector.load %arg7[%c1, %c0_17, %c0_18] : memref<3x8x128xf32, #tpu.memory_space<vmem>>, vector<1x8x128xf32>
    %27 = vector.shape_cast %26 : vector<1x8x128xf32> to vector<8x128xf32>
    %28 = vector.extract_strided_slice %25 {offsets = [0, 0], sizes = [56, 128], strides = [1, 1]} : vector<64x128xf32> to vector<56x128xf32>
    %29 = tpu.concatenate %27, %28 in 0 : vector<8x128xf32>, vector<56x128xf32> -> vector<64x128xf32>
    %30 = vector.extract_strided_slice %25 {offsets = [56, 0], sizes = [8, 128], strides = [1, 1]} : vector<64x128xf32> to vector<8x128xf32>
    %c1_19 = arith.constant 1 : index
    %c0_20 = arith.constant 0 : index
    %c0_21 = arith.constant 0 : index
    %31 = vector.load %arg7[%c1_19, %c0_20, %c0_21] : memref<3x8x128xf32, #tpu.memory_space<vmem>>, vector<1x8x128xf32>
    %32 = vector.shape_cast %31 : vector<1x8x128xf32> to vector<8x128xf32>
    %33 = vector.shape_cast %30 : vector<8x128xf32> to vector<1x8x128xf32>
    tpu.vector_store %arg7[%c1_19, %c0_20, %c0_21], %33 {strides = array<i32>} : memref<3x8x128xf32, #tpu.memory_space<vmem>>, vector<1x8x128xf32>,
    %c1_22 = arith.constant 1 : index
    %c0_23 = arith.constant 0 : index
    %c0_24 = arith.constant 0 : index
    %34 = vector.load %arg6[%c1_22, %c0_23, %c0_24] : memref<3x8x128xf32, #tpu.memory_space<vmem>>, vector<1x8x128xf32>
    %35 = vector.shape_cast %34 : vector<1x8x128xf32> to vector<8x128xf32>
    %36 = vector.shape_cast %30 : vector<8x128xf32> to vector<1x8x128xf32>
    tpu.vector_store %arg6[%c1_22, %c0_23, %c0_24], %36 {strides = array<i32>} : memref<3x8x128xf32, #tpu.memory_space<vmem>>, vector<1x8x128xf32>,
    %37 = tpu.concatenate %29, %25 in 1 : vector<64x128xf32>, vector<64x128xf32> -> vector<64x256xf32>
    %c0_25 = arith.constant 0 : index
    %c128 = arith.constant 128 : index
    %38 = vector.load %arg3[%c0_25, %c128] : memref<256x384xf32, #tpu.memory_space<vmem>>, vector<256x128xf32>
    %cst_26 = arith.constant dense<0.000000e+00> : vector<64x128xf32>
    %39 = tpu.matmul %37, %38, %cst_26 {dimension_numbers = #tpu.dot_dimension_numbers<[1], [0], [0], [1], [0, 0, 1, 1], [], []>} : vector<64x256xf32>, vector<256x128xf32>, vector<64x128xf32> -> vector<64x128xf32>
    %c0_27 = arith.constant 0 : index
    %c128_28 = arith.constant 128 : index
    %40 = vector.load %arg4[%c0_27, %c128_28] : memref<1x384xf32, #tpu.memory_space<vmem>>, vector<1x128xf32>
    %41 = vector.broadcast %40 : vector<1x128xf32> to vector<64x128xf32>
    %42 = arith.addf %39, %41 : vector<64x128xf32>
    %cst_29 = arith.constant 0.000000e+00 : f32
    %43 = vector.broadcast %cst_29 : f32 to vector<64x128xf32>
    %44 = arith.cmpf ogt, %42, %43 : vector<64x128xf32>
    %cst_30 = arith.constant 2.500000e-01 : f32
    %45 = vector.broadcast %cst_30 : f32 to vector<64x128xf32>
    %46 = arith.mulf %45, %42 : vector<64x128xf32>
    %47 = arith.select %44, %42, %46 : vector<64x128xi1>, vector<64x128xf32>
    %c2 = arith.constant 2 : index
    %c0_31 = arith.constant 0 : index
    %c0_32 = arith.constant 0 : index
    %48 = vector.load %arg7[%c2, %c0_31, %c0_32] : memref<3x8x128xf32, #tpu.memory_space<vmem>>, vector<1x8x128xf32>
    %49 = vector.shape_cast %48 : vector<1x8x128xf32> to vector<8x128xf32>
    %50 = vector.extract_strided_slice %47 {offsets = [0, 0], sizes = [56, 128], strides = [1, 1]} : vector<64x128xf32> to vector<56x128xf32>
    %51 = tpu.concatenate %49, %50 in 0 : vector<8x128xf32>, vector<56x128xf32> -> vector<64x128xf32>
    %52 = vector.extract_strided_slice %47 {offsets = [56, 0], sizes = [8, 128], strides = [1, 1]} : vector<64x128xf32> to vector<8x128xf32>
    %c2_33 = arith.constant 2 : index
    %c0_34 = arith.constant 0 : index
    %c0_35 = arith.constant 0 : index
    %53 = vector.load %arg7[%c2_33, %c0_34, %c0_35] : memref<3x8x128xf32, #tpu.memory_space<vmem>>, vector<1x8x128xf32>
    %54 = vector.shape_cast %53 : vector<1x8x128xf32> to vector<8x128xf32>
    %55 = vector.shape_cast %52 : vector<8x128xf32> to vector<1x8x128xf32>
    tpu.vector_store %arg7[%c2_33, %c0_34, %c0_35], %55 {strides = array<i32>} : memref<3x8x128xf32, #tpu.memory_space<vmem>>, vector<1x8x128xf32>,
    %c2_36 = arith.constant 2 : index
    %c0_37 = arith.constant 0 : index
    %c0_38 = arith.constant 0 : index
    %56 = vector.load %arg6[%c2_36, %c0_37, %c0_38] : memref<3x8x128xf32, #tpu.memory_space<vmem>>, vector<1x8x128xf32>
    %57 = vector.shape_cast %56 : vector<1x8x128xf32> to vector<8x128xf32>
    %58 = vector.shape_cast %52 : vector<8x128xf32> to vector<1x8x128xf32>
    tpu.vector_store %arg6[%c2_36, %c0_37, %c0_38], %58 {strides = array<i32>} : memref<3x8x128xf32, #tpu.memory_space<vmem>>, vector<1x8x128xf32>,
    %59 = tpu.concatenate %51, %47 in 1 : vector<64x128xf32>, vector<64x128xf32> -> vector<64x256xf32>
    %c0_39 = arith.constant 0 : index
    %c256 = arith.constant 256 : index
    %60 = vector.load %arg3[%c0_39, %c256] : memref<256x384xf32, #tpu.memory_space<vmem>>, vector<256x128xf32>
    %cst_40 = arith.constant dense<0.000000e+00> : vector<64x128xf32>
    %61 = tpu.matmul %59, %60, %cst_40 {dimension_numbers = #tpu.dot_dimension_numbers<[1], [0], [0], [1], [0, 0, 1, 1], [], []>} : vector<64x256xf32>, vector<256x128xf32>, vector<64x128xf32> -> vector<64x128xf32>
    %c0_41 = arith.constant 0 : index
    %c256_42 = arith.constant 256 : index
    %62 = vector.load %arg4[%c0_41, %c256_42] : memref<1x384xf32, #tpu.memory_space<vmem>>, vector<1x128xf32>
    %63 = vector.broadcast %62 : vector<1x128xf32> to vector<64x128xf32>
    %64 = arith.addf %61, %63 : vector<64x128xf32>
    %cst_43 = arith.constant 0.000000e+00 : f32
    %65 = vector.broadcast %cst_43 : f32 to vector<64x128xf32>
    %66 = arith.cmpf ogt, %64, %65 : vector<64x128xf32>
    %cst_44 = arith.constant 2.500000e-01 : f32
    %67 = vector.broadcast %cst_44 : f32 to vector<64x128xf32>
    %68 = arith.mulf %67, %64 : vector<64x128xf32>
    %69 = arith.select %66, %64, %68 : vector<64x128xi1>, vector<64x128xf32>
    %70 = tpu.concatenate %25, %47, %69 in 1 : vector<64x128xf32>, vector<64x128xf32>, vector<64x128xf32> -> vector<64x384xf32>
    %c0_45 = arith.constant 0 : index
    %c0_46 = arith.constant 0 : index
    %71 = vector.load %arg5[%c0_45, %c0_46] : memref<64x384xf32, #tpu.memory_space<vmem>>, vector<64x384xf32>
    tpu.vector_store %arg5[%c0_45, %c0_46], %70 {strides = array<i32>} : memref<64x384xf32, #tpu.memory_space<vmem>>, vector<64x384xf32>,
    return
  }
  func.func @transform_0(%arg0: i32) -> (i32, i32) {
    %c0_i32 = arith.constant 0 : i32
    %c0_i32_0 = arith.constant 0 : i32
    return %arg0, %c0_i32 : i32, i32
  }
  func.func @transform_1(%arg0: i32) -> (i32, i32, i32) {
    %c0_i32 = arith.constant 0 : i32
    %c0_i32_0 = arith.constant 0 : i32
    %c0_i32_1 = arith.constant 0 : i32
    %c0_i32_2 = arith.constant 0 : i32
    return %c0_i32, %c0_i32_0, %c0_i32_1 : i32, i32, i32
  }
  func.func @transform_2(%arg0: i32) -> (i32, i32) {
    %c0_i32 = arith.constant 0 : i32
    %c0_i32_0 = arith.constant 0 : i32
    %c0_i32_1 = arith.constant 0 : i32
    return %c0_i32, %c0_i32_0 : i32, i32
  }
  func.func @transform_3(%arg0: i32) -> (i32, i32) {
    %c0_i32 = arith.constant 0 : i32
    %c0_i32_0 = arith.constant 0 : i32
    %c0_i32_1 = arith.constant 0 : i32
    return %c0_i32, %c0_i32_0 : i32, i32
  }
  func.func @transform_4(%arg0: i32) -> (i32, i32) {
    %c0_i32 = arith.constant 0 : i32
    %c0_i32_0 = arith.constant 0 : i32
    return %arg0, %c0_i32 : i32, i32
  }
  func.func @transform_5(%arg0: i32) -> (i32, i32, i32) {
    %c0_i32 = arith.constant 0 : i32
    %c0_i32_0 = arith.constant 0 : i32
    %c0_i32_1 = arith.constant 0 : i32
    %c0_i32_2 = arith.constant 0 : i32
    return %c0_i32, %c0_i32_0, %c0_i32_1 : i32, i32, i32
  }
}

</mosaic_0001>

<bundles_post_ra>
// kernel: tpu_custom_call.1
= control target key start
LH: loop header
LB: loop body
LE: loop exit
PB: predicated region body
PF: predicated region fallthrough
CT: control target
= control target key end

     0   :  { %11 = vsyncpa [#allocation4], 0  ;;  %s1957_s0 = inlined_call_operand.hbm [shape: f32[256,128], index: 0, kind: input, shape index: {}]   ;;  %s1958_s1 = inlined_call_operand.hbm [shape: f32[3,8,128], index: 1, kind: input, shape index: {}]   ;;  %s1959_s2 = inlined_call_operand.hbm [shape: f32[256,384], index: 2, kind: input, shape index: {}]   ;;  %s1960_s3 = inlined_call_operand.vmem [shape: f32[1,384], index: 3, kind: input, shape index: {}]   ;;  %s1961_s4 = inlined_call_operand.hbm [shape: f32[256,384], index: 4, kind: output, shape index: {0}]   ;;  %s1962_s5 = inlined_call_operand.hbm [shape: f32[3,8,128], index: 5, kind: output, shape index: {1}]  }
   0x1   :  { %13 = vsyncpa [#allocation4 + $0x1], 0 }
   0x2   :  { %14 = vsyncpa [#allocation7], 0 }
   0x3   :  { %15 = vsyncpa [#allocation5], 0 }
   0x4   :  { %17 = vsyncpa [#allocation5 + $0x1], 0 }
   0x5   :  { %18 = vsyncpa [#allocation11], 0  ;;  %s1582_s18 = smov 0   ;;  %s1584_s19 = smov 0  }
   0x6   :  { %s1586_s20 = smov 0   ;;  %s1588_s21 = smov 0  }
   0x7 LB: > { %s1603_s22 = sadd.s32 4294967295, %s1537_s21   ;;  %s963_s23 = sadd.s32 4294967294, %s1537_s21   ;;  %s1537_s21 = sphi %s1588_s21, %s1987_s21   ;;  %s1533_s20 = sphi %s1586_s20, %s1986_s20   ;;  %s1529_s19 = sphi %s1584_s19, %s1985_s19   ;;  %s1525_s18 = sphi %s1582_s18, %s1984_s18  }
   0x8   : > { %p44_p0 = scmp.ne.s32.totalorder %s1529_s19, %s1525_s18  ;;  %p1963_p1 = scmp.eq.s32.totalorder %s1603_s22, 0 }
   0x9   : > { %p137_p3 = scmp.eq.s32.totalorder %s963_s23, 3  ;;  %p964_p5 = scmp.ge.s32.totalorder %s1537_s21, 1 }
   0xa   : > { %p1612_p4 = por %p1963_p1, %p44_p0  ;;  %p165_p7 = scmp.lt.s32.totalorder %s1537_s21, 5 }
   0xb   : > { %p1617_p6 = por %p137_p3, %p44_p0  ;;  %s1539_s27 = smov [#allocation6]  }
   0xc   : > { %s1966_s24 = scalar_select %p1612_p4, 1, 0 }
   0xd   : > { %s1967_s25 = scalar_select %p1617_p6, 1, 0 }
   0xe   : > { %p1623_p9 = pnand %p964_p5, %p165_p7  ;;  %s177_s28 = sshll.u32 %s1539_s27, 4  ;;  %s178_s28 = int_to_ptr.vmem [resolvable:$true] %s177_s28 }
   0xf   : > { %s1540_s30 = smov [#allocation8]   ;;  %s1351_s9 = scalar_lea.hbm %s1958_s1, 384 }
  0x10   : > { %s1968_s26 = scalar_select %p1623_p9, 1, 0 }
  0x11   : > { %p1285_p10 = pneg %p1623_p9  ;;  %s190_s6 = sshll.u32 %s1540_s30, 4  ;;  %s1635_s6 = int_to_ptr.vmem [resolvable:$true] %s190_s6 }
  0x12   : > { %p1352_p12 = scmp.ne.s32.totalorder %s1958_s1, %s1351_s9  ;;  %p1358_p5 = scmp.lt.u32.totalorder %s1351_s9, %s1958_s1 }
  0x13   : > { %p1631_p11 = pnand %p1285_p10, %p1963_p1 }
  0x15   : > { %p1353_p13 = pneg %p1631_p11 }
  0x17   : > { %p1354_p0 = pnand %p1353_p13, %p1352_p12 }
  0x19   : > { %p1355_p3 = pneg %p1354_p0 }
  0x1b   : > { %p1360_p7 = pnand %p1358_p5, %p1355_p3 }
  0x1d   : > { %1363 = shalt.err (!%p1360_p7)
}
  0x1e   : > { %s1364_s14 = scalar_lea.vmem %s178_s28, 384  ;;  %p1372_p2 = scmp.lt.s32.totalorder %s178_s28, %s178_s28 }
  0x1f   : > { %p1365_p10 = scmp.ne.s32.totalorder %s178_s28, %s1364_s14  ;;  %p1373_p6 = scmp.lt.s32.totalorder %s1364_s14, %s1364_s14 }
  0x21   : > { %p1367_p8 = pnand %p1365_p10, %p1353_p13  ;;  %p1374_p4 = por %p1373_p6, %p1372_p2 }
  0x23   : > { %p1368_p1 = pneg %p1367_p8 }
  0x25   : > { %p1375_p9 = pnand %p1374_p4, %p1368_p1 }
  0x27   : > { %1378 = shalt.err (!%p1375_p9)
}
  0x28   : > { %s1541_s15 = smov 128   ;;  %s1542_s16 = smov 8  }
  0x29   : > { %1288 = dma.hbm_to_vmem [thread:$0]  (!%p1631_p11), %s1958_s1, 384, %s178_s28, [#allocation7], %s1541_s15, %s1541_s15, %s1542_s16  }
  0x2a   : > { %s1379_s7 = scalar_lea.hbm %s1959_s2, 12288 }
  0x2b   : > { %p1380_p1 = scmp.ne.s32.totalorder %s1959_s2, %s1379_s7  ;;  %p1386_p6 = scmp.lt.u32.totalorder %s1379_s7, %s1959_s2 }
  0x2d   : > { %p1382_p2 = pnand %p1380_p1, %p1353_p13 }
  0x2f   : > { %p1383_p4 = pneg %p1382_p2 }
  0x31   : > { %p1388_p8 = pnand %p1386_p6, %p1383_p4 }
  0x33   : > { %1391 = shalt.err (!%p1388_p8)
}
  0x34   : > { %s1392_s28 = scalar_lea.vmem %s1635_s6, 12288  ;;  %p1400_p3 = scmp.lt.s32.totalorder %s1635_s6, %s1635_s6 }
  0x35   : > { %p1393_p9 = scmp.ne.s32.totalorder %s1635_s6, %s1392_s28  ;;  %p1401_p5 = scmp.lt.s32.totalorder %s1392_s28, %s1392_s28 }
  0x37   : > { %p1395_p12 = pnand %p1393_p9, %p1353_p13  ;;  %p1402_p7 = por %p1401_p5, %p1400_p3 }
  0x39   : > { %p1396_p0 = pneg %p1395_p12 }
  0x3b   : > { %p1403_p10 = pnand %p1402_p7, %p1396_p0 }
  0x3d   : > { %1406 = shalt.err (!%p1403_p10)
}
  0x3e   : > { %s1543_s12 = smov 384   ;;  %s1544_s13 = smov 24  }
  0x3f   : > { %1291 = dma.hbm_to_vmem [thread:$0]  (!%p1631_p11), %s1959_s2, 12288, %s1635_s6, [#allocation7], %s1543_s12, %s1543_s12, %s1544_s13  }
  0x40   : > { %s1688_s23 = sadd.s32 1, %s1537_s21   ;;  %s31_s30 = sadd.s32 1, %s1533_s20 }
  0x41   : > { %s28_s27 = ssub.s32 %s1537_s21, %s1688_s23  ;;  %p38_p1 = scmp.ne.s32.totalorder %s1533_s20, %s1529_s19 }
  0x42   : > { %p29_p13 = scmp.eq.s32.totalorder %s28_s27, 0  ;;  %p39_p2 = scmp.eq.s32.totalorder %s1537_s21, 0 }
  0x43   : > { %p1970_p6 = scmp.eq.s32.totalorder %s1603_s22, 3  ;;  %p1302_p9 = scmp.lt.s32.totalorder %s1537_s21, 4 }
  0x44   : > { %s1697_s7 = scalar_select %p29_p13, %s1533_s20, %s31_s30  }
  0x45   : > { %p40_p4 = por %p39_p2, %p38_p1  ;;  %p1701_p8 = por %p1970_p6, %p38_p1 }
  0x46   : > { %s207_s29 = sand.u32 1, %s1533_s20   ;;  %s986_s6 = sshll.u32 %s1537_s21, 10 }
  0x47   : > { %s968_s9 = sshll.u32 %s207_s29, 6  ;;  %s1711_s28 = scalar_lea.hbm %s1957_s0, %s986_s6 }
  0x48   : > { %s211_s12 = scalar_lea.vmem [#allocation3], %s968_s9  ;;  %p1715_p11 = pnand %p1302_p9, %p40_p4 }
  0x49   : > { %s218_s13 = sshll.u32 %s211_s12, 4  ;;  %s1719_s17 = scalar_lea.sflag [#allocation4], %s207_s29  ;;  %s1713_s13 = int_to_ptr.vmem [resolvable:$true] %s218_s13 }
  0x4a   : > { %s1407_s27 = scalar_lea.hbm %s1711_s28, 1024  ;;  %p1409_p0 = pneg %p1715_p11 }
  0x4b   : > { %p1408_p12 = scmp.ne.s32.totalorder %s1711_s28, %s1407_s27  ;;  %s1412_s6 = scalar_lea.hbm %s1957_s0, 4096 }
  0x4c   : > { %p1413_p7 = scmp.lt.u32.totalorder %s1711_s28, %s1957_s0  ;;  %p1414_p10 = scmp.lt.u32.totalorder %s1412_s6, %s1407_s27 }
  0x4d   : > { %p1410_p3 = pnand %p1409_p0, %p1408_p12  ;;  %p1416_p1 = scmp.lt.u32.totalorder %s1407_s27, %s1711_s28 }
  0x4e   : > { %p1415_p13 = por %p1414_p10, %p1413_p7 }
  0x4f   : > { %p1411_p5 = pneg %p1410_p3 }
  0x50   : > { %p1417_p2 = por %p1416_p1, %p1415_p13 }
  0x52   : > { %p1418_p4 = pnand %p1417_p2, %p1411_p5 }
  0x54   : > { %1421 = shalt.err (!%p1418_p4)
}
  0x55   : > { %s1422_s29 = scalar_lea.vmem %s1713_s13, 1024  ;;  %s1545_s12 = smov [#allocation3]  }
  0x56   : > { %p1423_p6 = scmp.ne.s32.totalorder %s1713_s13, %s1422_s29  ;;  %s1427_s30 = sshll.u32 %s1545_s12, 4  ;;  %s1428_s30 = int_to_ptr.vmem [resolvable:$false] %s1427_s30 }
  0x57   : > { %s1429_s9 = scalar_lea.vmem %s1428_s30, 2048  ;;  %p1430_p3 = scmp.lt.s32.totalorder %s1713_s13, %s1428_s30 }
  0x58   : > { %p1425_p9 = pnand %p1423_p6, %p1409_p0  ;;  %p1431_p7 = scmp.lt.s32.totalorder %s1429_s9, %s1422_s29 }
  0x5a   : > { %p1426_p12 = pneg %p1425_p9  ;;  %p1432_p10 = por %p1431_p7, %p1430_p3 }
  0x5c   : > { %p1433_p13 = pnand %p1432_p10, %p1426_p12 }
  0x5e   : > { %1436 = shalt.err (!%p1433_p13)
}
  0x5f   : > { %1295 = dma.hbm_to_vmem [thread:$0]  (!%p1715_p11), %s1711_s28, 1024, %s1713_s13, %s1719_s17, %s1541_s15, %s1541_s15, %s1542_s16  }
  0x60   : > { %p1973_p0 = scmp.ne.s32.totalorder %s1968_s26, 0 }
  0x61   : > { %s1753_s27 = sand.u32 (!%p1973_p0), 1, %s1529_s19   ;;  %p1974_p5 = scmp.ne.s32.totalorder (!%p1973_p0), %s1966_s24, 0 }
  0x62   : > { %230 = sbr.rel (%p1973_p0) target bundleno = 863 (0x35f), region = 36  ;;  %s972_s6 = sshll.u32 (!%p1973_p0), %s1753_s27, 6 }
  0x63   : > { %s233_s10 = scalar_lea.sflag (!%p1973_p0), [#allocation4], %s1753_s27  ;;  %s1757_s11 = scalar_lea.vmem (!%p1973_p0), [#allocation3], %s972_s6 }
  0x69   : > { %1508 = dma.done.wait (%p1974_p5), %s233_s10, 1024  }
  0x6a   : > { %1510 = vsyncadd (%p1974_p5), %s233_s10, 4294966272  ;;  %p1975_p11 = scmp.eq.s32.totalorder %s1603_s22, 0 }
  0x6c   : > { %1512 = dma.done.wait (%p1975_p11), [#allocation7], 12672   ;;  %p1976_p1 = pmov %p1975_p11 }
  0x6d   : > { %s1267_s26 = smul.u32 192, %s1753_s27  ;;  %p1977_p2 = scmp.ne.s32.totalorder %s1603_s22, 0 }
  0x6e   : > { %1514 = vsyncadd (%p1976_p1), [#allocation7], 4294954624  ;;  %v277_v0 = vld [vmem:[#allocation6] sm:$0xff] (!%p1977_p2)  ;;  %v278_v1 = vld [vmem:[#allocation6 + $0x8] sm:$0xff] (!%p1977_p2) }
  0x6f   : > { %s1768_s15 = scalar_lea.vmem [#allocation9], %s1267_s26  ;;  %276 = sbr.rel (%p1977_p2) target bundleno = 118 (0x76), region = 52  ;;  %v279_v2 = vld [vmem:[#allocation6 + $0x10] sm:$0xff] (!%p1977_p2)  ;;  %280 = vst [vmem:[#allocation2] sm:$0xff] (!%p1977_p2), %v277_v0  ;;  %281 = vst [vmem:[#allocation2 + $0x8] sm:$0xff] (!%p1977_p2), %v278_v1 }
  0x70   : > { %282 = vst [vmem:[#allocation2 + $0x10] sm:$0xff] (!%p1977_p2), %v279_v2 }
  0x76 PF: > { %v310_v3 = vld [vmem:[#allocation8 + $0x180] sm:$0xff]  ;;  %v311_v4 = vld [vmem:[#allocation8 + $0x198] sm:$0xff]  ;;  %v312_v8 = vld [vmem:[#allocation8 + $0x1b0] sm:$0xff]  ;;  %s1546_s14 = smov [#allocation10]   ;;  %p1978_p6 = scmp.eq.s32.totalorder %s1603_s22, 3 }
  0x77   : > { %v294_v5 = vld [vmem:[#allocation8] sm:$0xff]  ;;  %v1155_v6 = vpack.c.bf16 %v311_v4, %v310_v3  ;;  %v295_v7 = vld [vmem:[#allocation8 + $0x18] sm:$0xff]  ;;  %v313_v9 = vld [vmem:[#allocation8 + $0x1c8] sm:$0xff]  ;;  %s860_s17 = sshll.u32 %s1546_s14, 4  ;;  %s861_s17 = int_to_ptr.vmem [resolvable:$true] %s860_s17 }
  0x78   : > { %v1157_v10 = vpack.c.bf16 %v295_v7, %v294_v5  ;;  %v1159_v11 = vpack.c.bf16 %v313_v9, %v312_v8  ;;  %v296_v12 = vld [vmem:[#allocation8 + $0x30] sm:$0xff]  ;;  %v297_v13 = vld [vmem:[#allocation8 + $0x48] sm:$0xff]  ;;  %v314_v14 = vld [vmem:[#allocation8 + $0x1e0] sm:$0xff]  ;;  %s1437_s29 = scalar_lea.vmem %s861_s17, 384  ;;  %p1444_p3 = scmp.lt.s32.totalorder %s861_s17, %s861_s17 }
  0x79   : > { %1156 = vmatprep.subr.bf16.mxu0 %v1155_v6  ;;  %v315_v15 = vld [vmem:[#allocation8 + $0x1f8] sm:$0xff]  ;;  %v1161_v16 = vpack.c.bf16 %v297_v13, %v296_v12  ;;  %v298_v18 = vld [vmem:[#allocation8 + $0x60] sm:$0xff]  ;;  %v316_v20 = vld [vmem:[#allocation8 + $0x210] sm:$0xff]  ;;  %p1438_p4 = scmp.ne.s32.totalorder %s861_s17, %s1437_s29  ;;  %p1445_p7 = scmp.lt.s32.totalorder %s1437_s29, %s1437_s29 }
  0x7a   : > { %1158 = vmatpush3.bf16.msra.mxu0 %v1157_v10  ;;  %v1163_v17 = vpack.c.bf16 %v315_v15, %v314_v14  ;;  %v299_v19 = vld [vmem:[#allocation8 + $0x78] sm:$0xff]  ;;  %v317_v21 = vld [vmem:[#allocation8 + $0x228] sm:$0xff]  ;;  %v300_v24 = vld [vmem:[#allocation8 + $0x90] sm:$0xff] }
  0x7b   : > { %1160 = vmatprep.subr.bf16.mxu0 %v1159_v11  ;;  %v1165_v22 = vpack.c.bf16 %v299_v19, %v298_v18  ;;  %v1167_v23 = vpack.c.bf16 %v317_v21, %v316_v20  ;;  %v301_v25 = vld [vmem:[#allocation8 + $0xa8] sm:$0xff]  ;;  %v318_v26 = vld [vmem:[#allocation8 + $0x240] sm:$0xff]  ;;  %v319_v27 = vld [vmem:[#allocation8 + $0x258] sm:$0xff]  ;;  %p1439_p9 = pnand %p1438_p4, %p1978_p6  ;;  %p1446_p10 = por %p1445_p7, %p1444_p3 }
  0x7c   : > { %v1773_v28 = vld [vmem:[%s1757_s11] sm:$0xff]  ;;  %v302_v29 = vld [vmem:[#allocation8 + $0xc0] sm:$0xff]  ;;  %v1169_v30 = vpack.c.bf16 %v301_v25, %v300_v24  ;;  %v303_v31 = vld [vmem:[#allocation8 + $0xd8] sm:$0xff]  ;;  %v1171_v34 = vpack.c.bf16 %v319_v27, %v318_v26 }
  0x7d   : > { %397 = vmatprep.mubr.f32.mxu0 %v1773_v28  ;;  %v320_v32 = vld [vmem:[#allocation8 + $0x270] sm:$0xff]  ;;  %v321_v33 = vld [vmem:[#allocation8 + $0x288] sm:$0xff]  ;;  %v1779_v36 = vld [vmem:[%s1757_s11 + $0x38] sm:$0xff]  ;;  %v1173_v46 = vpack.c.bf16 %v303_v31, %v302_v29  ;;  %p1440_p12 = pneg %p1439_p9 }
  0x7e   : > { %1162 = vmatpush3.bf16.msra.mxu0 %v1161_v16  ;;  %v1776_v35 = vld [vmem:[#allocation2] sm:$0xff]  ;;  %v483_v37 = vld [vmem:[#allocation8 + $0x188] sm:$0xff]  ;;  %293 = vst [vmem:[#allocation10] sm:$0xff] %v1779_v36  ;;  %v484_v38 = vld [vmem:[#allocation8 + $0x1a0] sm:$0xff]  ;;  %v1175_v51 = vpack.c.bf16 %v321_v33, %v320_v32 }
  0x7f   : > { %1164 = vmatprep.subr.bf16.mxu0 %v1163_v17  ;;  %292 = vst [vmem:[#allocation2] sm:$0xff] %v1779_v36  ;;  %v467_v39 = vld [vmem:[#allocation8 + $0x8] sm:$0xff]  ;;  %v468_v40 = vld [vmem:[#allocation8 + $0x20] sm:$0xff]  ;;  %v1187_v41 = vpack.c.bf16 %v484_v38, %v483_v37  ;;  %v485_v43 = vld [vmem:[#allocation8 + $0x1b8] sm:$0xff]  ;;  %p1447_p13 = pnand %p1446_p10, %p1440_p12 }
  0x80   : > { %v1189_v42 = vpack.c.bf16 %v468_v40, %v467_v39  ;;  %v486_v44 = vld [vmem:[#allocation8 + $0x1d0] sm:$0xff]  ;;  %v469_v45 = vld [vmem:[#allocation8 + $0x38] sm:$0xff]  ;;  %v487_v49 = vld [vmem:[#allocation8 + $0x1e8] sm:$0xff] }
  0x81   : > { %v1191_v47 = vpack.c.bf16 %v486_v44, %v485_v43  ;;  %v470_v48 = vld [vmem:[#allocation8 + $0x50] sm:$0xff]  ;;  %v488_v50 = vld [vmem:[#allocation8 + $0x200] sm:$0xff]  ;;  %v305_v53 = vld [vmem:[#allocation8 + $0x108] sm:$0xff]  ;;  %1188 = vmatprep.subr.bf16.mxu1 %v1187_v41 }
  0x82   : > { %1166 = vmatpush3.bf16.msra.mxu0 %v1165_v22  ;;  %v304_v52 = vld [vmem:[#allocation8 + $0xf0] sm:$0xff]  ;;  %v322_v54 = vld [vmem:[#allocation8 + $0x2a0] sm:$0xff]  ;;  %v323_v55 = vld [vmem:[#allocation8 + $0x2b8] sm:$0xff]  ;;  %1190 = vmatpush3.bf16.msra.mxu1 %v1189_v42  ;;  %v1193_v56 = vpack.c.bf16 %v470_v48, %v469_v45  ;;  %v1195_v57 = vpack.c.bf16 %v488_v50, %v487_v49 }
  0x83   : > { %1168 = vmatprep.subr.bf16.mxu0 %v1167_v23  ;;  %1192 = vmatprep.subr.bf16.mxu1 %v1191_v47  ;;  %v471_v58 = vld [vmem:[#allocation8 + $0x68] sm:$0xff]  ;;  %v472_v59 = vld [vmem:[#allocation8 + $0x80] sm:$0xff]  ;;  %v1177_v60 = vpack.c.bf16 %v305_v53, %v304_v52  ;;  %v489_v61 = vld [vmem:[#allocation8 + $0x218] sm:$0xff]  ;;  %v1179_v63 = vpack.c.bf16 %v323_v55, %v322_v54 }
  0x84   : > { %v490_v62 = vld [vmem:[#allocation8 + $0x230] sm:$0xff]  ;;  %v306_v0 = vld [vmem:[#allocation8 + $0x120] sm:$0xff]  ;;  %v307_v1 = vld [vmem:[#allocation8 + $0x138] sm:$0xff]  ;;  %v1197_v4 = vpack.c.bf16 %v472_v59, %v471_v58 }
  0x85   : > { %v324_v2 = vld [vmem:[#allocation8 + $0x2d0] sm:$0xff]  ;;  %v325_v3 = vld [vmem:[#allocation8 + $0x2e8] sm:$0xff]  ;;  %v1199_v5 = vpack.c.bf16 %v490_v62, %v489_v61  ;;  %v473_v6 = vld [vmem:[#allocation8 + $0x98] sm:$0xff]  ;;  %v1181_v8 = vpack.c.bf16 %v307_v1, %v306_v0 }
  0x86   : > { %1170 = vmatpush3.bf16.msra.mxu0 %v1169_v30  ;;  %1194 = vmatpush3.bf16.msra.mxu1 %v1193_v56  ;;  %v474_v7 = vld [vmem:[#allocation8 + $0xb0] sm:$0xff]  ;;  %v491_v9 = vld [vmem:[#allocation8 + $0x248] sm:$0xff]  ;;  %v492_v10 = vld [vmem:[#allocation8 + $0x260] sm:$0xff]  ;;  %v1183_v11 = vpack.c.bf16 %v325_v3, %v324_v2 }
  0x87   : > { %1172 = vmatprep.subr.bf16.mxu0 %v1171_v34  ;;  %1196 = vmatprep.subr.bf16.mxu1 %v1195_v57  ;;  %v308_v12 = vld [vmem:[#allocation8 + $0x150] sm:$0xff]  ;;  %v309_v13 = vld [vmem:[#allocation8 + $0x168] sm:$0xff]  ;;  %v1201_v14 = vpack.c.bf16 %v474_v7, %v473_v6  ;;  %v1203_v15 = vpack.c.bf16 %v492_v10, %v491_v9  ;;  %v476_v17 = vld [vmem:[#allocation8 + $0xe0] sm:$0xff] }
  0x88   : > { %v475_v16 = vld [vmem:[#allocation8 + $0xc8] sm:$0xff]  ;;  %v1185_v18 = vpack.c.bf16 %v309_v13, %v308_v12  ;;  %v493_v19 = vld [vmem:[#allocation8 + $0x278] sm:$0xff]  ;;  %v494_v20 = vld [vmem:[#allocation8 + $0x290] sm:$0xff] }
  0x89   : > { %v1205_v21 = vpack.c.bf16 %v476_v17, %v475_v16  ;;  %v1207_v22 = vpack.c.bf16 %v494_v20, %v493_v19  ;;  %v477_v23 = vld [vmem:[#allocation8 + $0xf8] sm:$0xff]  ;;  %v478_v24 = vld [vmem:[#allocation8 + $0x110] sm:$0xff]  ;;  %v286_v29 = vld [vmem:[%s1757_s11 + $0x18] sm:$0xff] }
  0x8a   : > { %1174 = vmatpush3.bf16.msra.mxu0 %v1173_v46  ;;  %1198 = vmatpush3.bf16.msra.mxu1 %v1197_v4  ;;  %v284_v25 = vld [vmem:[%s1757_s11 + $0x8] sm:$0xff]  ;;  %v1209_v26 = vpack.c.bf16 %v478_v24, %v477_v23  ;;  %v285_v27 = vld [vmem:[%s1757_s11 + $0x10] sm:$0xff]  ;;  %v287_v30 = vld [vmem:[%s1757_s11 + $0x20] sm:$0xff] }
  0x8b   : > { %1176 = vmatprep.subr.bf16.mxu0 %v1175_v51  ;;  %1200 = vmatprep.subr.bf16.mxu1 %v1199_v5  ;;  %v288_v31 = vld [vmem:[%s1757_s11 + $0x28] sm:$0xff]  ;;  %v289_v32 = vld [vmem:[%s1757_s11 + $0x30] sm:$0xff]  ;;  %v495_v33 = vld [vmem:[#allocation8 + $0x2a8] sm:$0xff] }
  0x8c   : > { %v496_v34 = vld [vmem:[#allocation8 + $0x2c0] sm:$0xff]  ;;  %v497_v39 = vld [vmem:[#allocation8 + $0x2d8] sm:$0xff]  ;;  %v498_v40 = vld [vmem:[#allocation8 + $0x2f0] sm:$0xff] }
  0x8d   : > { %v480_v37 = vld [vmem:[#allocation8 + $0x140] sm:$0xff]  ;;  %v1215_v41 = vpack.c.bf16 %v498_v40, %v497_v39  ;;  %v481_v42 = vld [vmem:[#allocation8 + $0x158] sm:$0xff]  ;;  %v482_v43 = vld [vmem:[#allocation8 + $0x170] sm:$0xff] }
  0x8e   : > { %1178 = vmatpush3.bf16.msra.mxu0 %v1177_v60  ;;  %1202 = vmatpush3.bf16.msra.mxu1 %v1201_v14  ;;  %v1217_v44 = vpack.c.bf16 %v482_v43, %v481_v42  ;;  %v656_v45 = vld [vmem:[#allocation8 + $0x190] sm:$0xff]  ;;  %v657_v46 = vld [vmem:[#allocation8 + $0x1a8] sm:$0xff]  ;;  %v658_v49 = vld [vmem:[#allocation8 + $0x1c0] sm:$0xff] }
  0x8f   : > { %1180 = vmatprep.subr.bf16.mxu0 %v1179_v63  ;;  %1204 = vmatprep.subr.bf16.mxu1 %v1203_v15  ;;  %v1219_v47 = vpack.c.bf16 %v657_v46, %v656_v45  ;;  %v641_v48 = vld [vmem:[#allocation8 + $0x28] sm:$0xff]  ;;  %v659_v50 = vld [vmem:[#allocation8 + $0x1d8] sm:$0xff]  ;;  %v642_v53 = vld [vmem:[#allocation8 + $0x40] sm:$0xff] }
  0x90   : > { %v1792_v52 = vpack.c.bf16 %v659_v50, %v658_v49  ;;  %v643_v54 = vld [vmem:[#allocation8 + $0x58] sm:$0xff]  ;;  %v660_v55 = vld [vmem:[#allocation8 + $0x1f0] sm:$0xff]  ;;  %v661_v56 = vld [vmem:[#allocation8 + $0x208] sm:$0xff] }
  0x91   : > { %v1794_v57 = vpack.c.bf16 %v643_v54, %v642_v53  ;;  %v1797_v58 = vpack.c.bf16 %v661_v56, %v660_v55  ;;  %v644_v59 = vld [vmem:[#allocation8 + $0x70] sm:$0xff]  ;;  %v645_v60 = vld [vmem:[#allocation8 + $0x88] sm:$0xff]  ;;  %v662_v61 = vld [vmem:[#allocation8 + $0x220] sm:$0xff] }
  0x92   : > { %1182 = vmatpush3.bf16.msra.mxu0 %v1181_v8  ;;  %1206 = vmatpush3.bf16.msra.mxu1 %v1205_v21  ;;  %v663_v62 = vld [vmem:[#allocation8 + $0x238] sm:$0xff]  ;;  %v1800_v63 = vpack.c.bf16 %v645_v60, %v644_v59  ;;  %v646_v1 = vld [vmem:[#allocation8 + $0xa0] sm:$0xff]  ;;  %v664_v3 = vld [vmem:[#allocation8 + $0x250] sm:$0xff] }
  0x93   : > { %1184 = vmatprep.subr.bf16.mxu0 %v1183_v11  ;;  %1208 = vmatprep.subr.bf16.mxu1 %v1207_v22  ;;  %v1803_v0 = vpack.c.bf16 %v663_v62, %v662_v61  ;;  %v647_v2 = vld [vmem:[#allocation8 + $0xb8] sm:$0xff]  ;;  %v665_v4 = vld [vmem:[#allocation8 + $0x268] sm:$0xff]  ;;  %v648_v7 = vld [vmem:[#allocation8 + $0xd0] sm:$0xff] }
  0x94   : > { %v1806_v5 = vpack.c.bf16 %v647_v2, %v646_v1  ;;  %v1809_v6 = vpack.c.bf16 %v665_v4, %v664_v3  ;;  %v649_v8 = vld [vmem:[#allocation8 + $0xe8] sm:$0xff]  ;;  %v666_v9 = vld [vmem:[#allocation8 + $0x280] sm:$0xff]  ;;  %v667_v10 = vld [vmem:[#allocation8 + $0x298] sm:$0xff] }
  0x95   : > { %v1812_v11 = vpack.c.bf16 %v649_v8, %v648_v7  ;;  %v1815_v12 = vpack.c.bf16 %v667_v10, %v666_v9  ;;  %v650_v13 = vld [vmem:[#allocation8 + $0x100] sm:$0xff]  ;;  %v651_v14 = vld [vmem:[#allocation8 + $0x118] sm:$0xff]  ;;  %v1825_v17 = vld [vmem:[%s1960_s3] ss:$0 sm:$0xff] }
  0x96   : > { %1186 = vmatpush3.bf16.msra.mxu0 %v1185_v18  ;;  %1210 = vmatpush3.bf16.msra.mxu1 %v1209_v26  ;;  %v1818_v15 = vpack.c.bf16 %v651_v14, %v650_v13  ;;  %v668_v2 = vld [vmem:[#allocation8 + $0x2b0] sm:$0xff]  ;;  %v669_v3 = vld [vmem:[#allocation8 + $0x2c8] sm:$0xff]  ;;  %v670_v8 = vld [vmem:[#allocation8 + $0x2e0] sm:$0xff] }
  0x97   : > { %1220 = vmatprep.subr.bf16.mxu0 %v1219_v47  ;;  %v1243_v4 = vpack.c.bf16 %v669_v3, %v668_v2  ;;  %v671_v9 = vld [vmem:[#allocation8 + $0x2f8] sm:$0xff] }
  0x98   : > { %v1247_v10 = vpack.c.bf16 %v671_v9, %v670_v8 }
  0x99   : > { %398 = vmatmul.mubr.f32.vlgmr.msra.gmra.mrb[0].mxu0 %v1776_v35  ;;  %v479_v35 = vld [vmem:[#allocation8 + $0x128] sm:$0xff] }
  0x9a   : > { %402 = vmatprep.mubr.f32.mxu0 %v284_v25  ;;  %v1213_v38 = vpack.c.bf16 %v480_v37, %v479_v35 }
  0x9d   : > { %403 = vmatmul.mubr.f32.gmra.mrb[2].mxu0 %v1773_v28  ;;  %v1211_v28 = vpack.c.bf16 %v496_v34, %v495_v33 }
  0x9e   : > { %407 = vmatprep.mubr.f32.mxu0 %v285_v27 }
  0x9f   : > { %1212 = vmatprep.subr.bf16.mxu1 %v1211_v28 }
  0xa0   : > { %1214 = vmatpush3.bf16.msra.mxu1 %v1213_v38 }
  0xa1   : > { %408 = vmatmul.mubr.f32.gmra.mrb[4].mxu0 %v284_v25  ;;  %1216 = vmatprep.subr.bf16.mxu1 %v1215_v41  ;;  %v463_v25 = vld [vmem:[#allocation2 + $0x8] sm:$0xff] }
  0xa2   : > { %412 = vmatprep.mubr.f32.mxu0 %v286_v29 }
  0xa4   : > { %1218 = vmatpush3.bf16.msra.mxu1 %v1217_v44 }
  0xa5   : > { %413 = vmatmul.mubr.f32.gmra.mrb[6].mxu0 %v285_v27  ;;  %1251 = vmatprep.subr.bf16.mxu1 %v1219_v47 }
  0xa6   : > { %417 = vmatprep.mubr.f32.mxu0 %v287_v30 }
  0xa9   : > { %418 = vmatmul.mubr.f32.gmra.mrb[8].mxu0 %v286_v29 }
  0xaa   : > { %422 = vmatprep.mubr.f32.mxu0 %v288_v31 }
  0xad   : > { %423 = vmatmul.mubr.f32.gmra.mrb[10].mxu0 %v287_v30 }
  0xae   : > { %427 = vmatprep.mubr.f32.mxu0 %v289_v32 }
  0xb1   : > { %428 = vmatmul.mubr.f32.gmra.mrb[12].mxu0 %v288_v31 }
  0xb2   : > { %432 = vmatprep.mubr.f32.mxu0 %v1779_v36  ;;  %v640_v36 = vld [vmem:[#allocation8 + $0x10] sm:$0xff] }
  0xb3   : > { %v1221_v51 = vpack.c.bf16 %v641_v48, %v640_v36 }
  0xb5   : > { %433 = vmatmul.mubr.f32.gmra.mrb[14].mxu0 %v289_v32 }
  0xb6   : > { %1222 = vmatpush3.bf16.msra.mxu0 %v1221_v51 }
  0xb7   : > { %1224 = vmatprep.subr.bf16.mxu0 %v1792_v52 }
  0xba   : > { %1226 = vmatpush3.bf16.msra.mxu0 %v1794_v57 }
  0xbb   : > { %1228 = vmatprep.subr.bf16.mxu0 %v1797_v58 }
  0xbe   : > { %1230 = vmatpush3.bf16.msra.mxu0 %v1800_v63 }
  0xbf   : > { %1232 = vmatprep.subr.bf16.mxu0 %v1803_v0 }
  0xc2   : > { %1234 = vmatpush3.bf16.msra.mxu0 %v1806_v5 }
  0xc3   : > { %1236 = vmatprep.subr.bf16.mxu0 %v1809_v6 }
  0xc6   : > { %1238 = vmatpush3.bf16.msra.mxu0 %v1812_v11 }
  0xc7   : > { %1240 = vmatprep.subr.bf16.mxu0 %v1815_v12 }
  0xca   : > { %1242 = vmatpush3.bf16.msra.mxu0 %v1818_v15 }
  0xcb   : > { %1244 = vmatprep.subr.bf16.mxu0 %v1243_v4 }
 0x16c   : > { %v1019_v16 = vpop.f32.mrb[0].mxu0 }
 0x16d   : > { %v1020_v18 = vpop.f32.mrb[1].mxu0 }
 0x16e   : > { %v1021_v19 = vadd.f32 %v1020_v18, %v1019_v16 }
 0x170   : > { %v400_v20 = vadd.f32 %v1021_v19, %v1825_v17  ;;  %v1022_v21 = vpop.f32.mrb[2].mxu0 }
 0x171   : > { %v1023_v22 = vpop.f32.mrb[3].mxu0 }
 0x172   : > { %v1024_v23 = vadd.f32 %v1023_v22, %v1022_v21  ;;  %vm438_vm0 = vcmp.gt.f32.partialorder %v400_v20, 0.0  ;;  %v446_v24 = vmul.f32 0.25, %v400_v20 }
 0x174   : > { %v405_v26 = vadd.f32 %v1024_v23, %v1825_v17  ;;  %v1025_v27 = vpop.f32.mrb[4].mxu0  ;;  %v454_v29 = vsel %vm438_vm0, %v400_v20, %v446_v24  ;;  %v636_v23 = vld [vmem:[#allocation2 + $0x10] sm:$0xff] }
 0x175   : > { %v1026_v30 = vpop.f32.mrb[5].mxu0  ;;  %570 = vmatprep.mubr.f32.mxu1 %v454_v29  ;;  %808 = vst [vmem:[%s1768_s15] sm:$0xff] %v454_v29 }
 0x176   : > { %v1027_v31 = vadd.f32 %v1026_v30, %v1025_v27  ;;  %571 = vmatmul.mubr.f32.vlgmr.msra.gmra.mrb[0].mxu1 %v463_v25  ;;  %vm439_vm1 = vcmp.gt.f32.partialorder %v405_v26, 0.0  ;;  %v447_v32 = vmul.f32 0.25, %v405_v26 }
 0x177   : > { %1259 = vmatpush3.bf16.msra.mxu1 %v1221_v51 }
 0x178   : > { %v410_v33 = vadd.f32 %v1027_v31, %v1825_v17  ;;  %v1028_v34 = vpop.f32.mrb[6].mxu0  ;;  %v455_v28 = vsel %vm439_vm1, %v405_v26, %v447_v32  ;;  %1252 = vmatprep.subr.bf16.mxu1 %v1792_v52 }
 0x179   : > { %v1029_v35 = vpop.f32.mrb[7].mxu0  ;;  %575 = vmatprep.mubr.f32.mxu1 %v455_v28  ;;  %811 = vst [vmem:[%s1768_s15 + $0x18] sm:$0xff] %v455_v28 }
 0x17a   : > { %v1030_v37 = vadd.f32 %v1029_v35, %v1028_v34  ;;  %576 = vmatmul.mubr.f32.gmra.mrb[2].mxu1 %v454_v29  ;;  %vm440_vm2 = vcmp.gt.f32.partialorder %v410_v33, 0.0  ;;  %v448_v38 = vmul.f32 0.25, %v410_v33 }
 0x17b   : > { %1260 = vmatpush3.bf16.msra.mxu1 %v1794_v57 }
 0x17c   : > { %v415_v39 = vadd.f32 %v1030_v37, %v1825_v17  ;;  %v1031_v40 = vpop.f32.mrb[8].mxu0  ;;  %v456_v41 = vsel %vm440_vm2, %v410_v33, %v448_v38  ;;  %1253 = vmatprep.subr.bf16.mxu1 %v1797_v58 }
 0x17d   : > { %v1032_v42 = vpop.f32.mrb[9].mxu0  ;;  %580 = vmatprep.mubr.f32.mxu1 %v456_v41  ;;  %814 = vst [vmem:[%s1768_s15 + $0x30] sm:$0xff] %v456_v41 }
 0x17e   : > { %v1033_v43 = vadd.f32 %v1032_v42, %v1031_v40  ;;  %581 = vmatmul.mubr.f32.gmra.mrb[4].mxu1 %v455_v28  ;;  %vm441_vm3 = vcmp.gt.f32.partialorder %v415_v39, 0.0  ;;  %v449_v44 = vmul.f32 0.25, %v415_v39 }
 0x17f   : > { %1261 = vmatpush3.bf16.msra.mxu1 %v1800_v63 }
 0x180   : > { %v420_v45 = vadd.f32 %v1033_v43, %v1825_v17  ;;  %v1034_v46 = vpop.f32.mrb[10].mxu0  ;;  %v457_v36 = vsel %vm441_vm3, %v415_v39, %v449_v44  ;;  %1254 = vmatprep.subr.bf16.mxu1 %v1803_v0 }
 0x181   : > { %v1035_v47 = vpop.f32.mrb[11].mxu0  ;;  %585 = vmatprep.mubr.f32.mxu1 %v457_v36  ;;  %817 = vst [vmem:[%s1768_s15 + $0x48] sm:$0xff] %v457_v36 }
 0x182   : > { %v1036_v48 = vadd.f32 %v1035_v47, %v1034_v46  ;;  %586 = vmatmul.mubr.f32.gmra.mrb[6].mxu1 %v456_v41  ;;  %vm442_vm4 = vcmp.gt.f32.partialorder %v420_v45, 0.0  ;;  %v450_v49 = vmul.f32 0.25, %v420_v45 }
 0x183   : > { %1262 = vmatpush3.bf16.msra.mxu1 %v1806_v5  ;;  %v652_v5 = vld [vmem:[#allocation8 + $0x130] sm:$0xff] }
 0x184   : > { %v425_v50 = vadd.f32 %v1036_v48, %v1825_v17  ;;  %v1037_v51 = vpop.f32.mrb[12].mxu0  ;;  %v458_v52 = vsel %vm442_vm4, %v420_v45, %v450_v49  ;;  %1255 = vmatprep.subr.bf16.mxu1 %v1809_v6  ;;  %v653_v6 = vld [vmem:[#allocation8 + $0x148] sm:$0xff] }
 0x185   : > { %v1038_v53 = vpop.f32.mrb[13].mxu0  ;;  %590 = vmatprep.mubr.f32.mxu1 %v458_v52  ;;  %820 = vst [vmem:[%s1768_s15 + $0x60] sm:$0xff] %v458_v52  ;;  %v1245_v7 = vpack.c.bf16 %v653_v6, %v652_v5 }
 0x186   : > { %v1039_v54 = vadd.f32 %v1038_v53, %v1037_v51  ;;  %591 = vmatmul.mubr.f32.gmra.mrb[8].mxu1 %v457_v36  ;;  %vm443_vm5 = vcmp.gt.f32.partialorder %v425_v50, 0.0  ;;  %v451_v55 = vmul.f32 0.25, %v425_v50 }
 0x187   : > { %1263 = vmatpush3.bf16.msra.mxu1 %v1812_v11  ;;  %1246 = vmatpush3.bf16.msra.mxu0 %v1245_v7  ;;  %v654_v11 = vld [vmem:[#allocation8 + $0x160] sm:$0xff] }
 0x188   : > { %v430_v56 = vadd.f32 %v1039_v54, %v1825_v17  ;;  %v1040_v57 = vpop.f32.mrb[14].mxu0  ;;  %v459_v58 = vsel %vm443_vm5, %v425_v50, %v451_v55  ;;  %1256 = vmatprep.subr.bf16.mxu1 %v1815_v12  ;;  %v655_v12 = vld [vmem:[#allocation8 + $0x178] sm:$0xff]  ;;  %1248 = vmatprep.subr.bf16.mxu0 %v1247_v10 }
 0x189   : > { %v1041_v59 = vpop.f32.mrb[15].mxu0  ;;  %595 = vmatprep.mubr.f32.mxu1 %v459_v58  ;;  %823 = vst [vmem:[%s1768_s15 + $0x78] sm:$0xff] %v459_v58  ;;  %v1249_v13 = vpack.c.bf16 %v655_v12, %v654_v11 }
 0x18a   : > { %v1042_v60 = vadd.f32 %v1041_v59, %v1040_v57  ;;  %596 = vmatmul.mubr.f32.gmra.mrb[10].mxu1 %v458_v52  ;;  %vm444_vm6 = vcmp.gt.f32.partialorder %v430_v56, 0.0  ;;  %v452_v61 = vmul.f32 0.25, %v430_v56 }
 0x18b   : > { %1264 = vmatpush3.bf16.msra.mxu1 %v1818_v15  ;;  %1250 = vmatpush3.bf16.msra.mxu0 %v1249_v13  ;;  %v1856_v15 = vld [vmem:[%s1960_s3 + $0x1] ss:$0 sm:$0xff] }
 0x18c   : > { %v435_v62 = vadd.f32 %v1042_v60, %v1825_v17  ;;  %v460_v63 = vsel %vm444_vm6, %v430_v56, %v452_v61  ;;  %1257 = vmatprep.subr.bf16.mxu1 %v1243_v4 }
 0x18d   : > { %600 = vmatprep.mubr.f32.mxu1 %v460_v63  ;;  %826 = vst [vmem:[%s1768_s15 + $0x90] sm:$0xff] %v460_v63 }
 0x18e   : > { %v453_v0 = vmul.f32 0.25, %v435_v62  ;;  %601 = vmatmul.mubr.f32.gmra.mrb[12].mxu1 %v459_v58  ;;  %vm445_vm7 = vcmp.gt.f32.partialorder %v435_v62, 0.0 }
 0x18f   : > { %1265 = vmatpush3.bf16.msra.mxu1 %v1245_v7 }
 0x190   : > { %v461_v1 = vsel %vm445_vm7, %v435_v62, %v453_v0  ;;  %1258 = vmatprep.subr.bf16.mxu1 %v1247_v10 }
 0x191   : > { %464 = vst [vmem:[#allocation2 + $0x8] sm:$0xff] %v461_v1  ;;  %466 = vst [vmem:[#allocation10 + $0x8] sm:$0xff] %v461_v1  ;;  %605 = vmatprep.mubr.f32.mxu1 %v461_v1 }
 0x192   : > { %829 = vst [vmem:[%s1768_s15 + $0xa8] sm:$0xff] %v461_v1  ;;  %606 = vmatmul.mubr.f32.gmra.mrb[14].mxu1 %v460_v63 }
 0x193   : > { %1266 = vmatpush3.bf16.msra.mxu1 %v1249_v13 }
 0x249   : > { %v1075_v14 = vpop.f32.mrb[0].mxu1 }
 0x24a   : > { %v1076_v16 = vpop.f32.mrb[1].mxu1 }
 0x24b   : > { %v1077_v17 = vadd.f32 %v1076_v16, %v1075_v14 }
 0x24d   : > { %v573_v18 = vadd.f32 %v1077_v17, %v1856_v15  ;;  %v1078_v19 = vpop.f32.mrb[2].mxu1 }
 0x24e   : > { %v1079_v20 = vpop.f32.mrb[3].mxu1 }
 0x24f   : > { %v1080_v21 = vadd.f32 %v1079_v20, %v1078_v19  ;;  %vm611_vm8 = vcmp.gt.f32.partialorder %v573_v18, 0.0  ;;  %v619_v22 = vmul.f32 0.25, %v573_v18 }
 0x251   : > { %v578_v24 = vadd.f32 %v1080_v21, %v1856_v15  ;;  %v1081_v25 = vpop.f32.mrb[4].mxu1  ;;  %v627_v26 = vsel %vm611_vm8, %v573_v18, %v619_v22 }
 0x252   : > { %v1082_v27 = vpop.f32.mrb[5].mxu1  ;;  %743 = vmatprep.mubr.f32.mxu0 %v627_v26  ;;  %809 = vst [vmem:[%s1768_s15 + $0x8] sm:$0xff] %v627_v26 }
 0x253   : > { %v1083_v29 = vadd.f32 %v1082_v27, %v1081_v25  ;;  %744 = vmatmul.mubr.f32.vlgmr.msra.gmra.mrb[16].mxu0 %v636_v23  ;;  %vm612_vm9 = vcmp.gt.f32.partialorder %v578_v24, 0.0  ;;  %v620_v30 = vmul.f32 0.25, %v578_v24 }
 0x255   : > { %v583_v31 = vadd.f32 %v1083_v29, %v1856_v15  ;;  %v1084_v32 = vpop.f32.mrb[6].mxu1  ;;  %v628_v33 = vsel %vm612_vm9, %v578_v24, %v620_v30 }
 0x256   : > { %v1085_v34 = vpop.f32.mrb[7].mxu1  ;;  %748 = vmatprep.mubr.f32.mxu0 %v628_v33  ;;  %812 = vst [vmem:[%s1768_s15 + $0x20] sm:$0xff] %v628_v33 }
 0x257   : > { %v1086_v28 = vadd.f32 %v1085_v34, %v1084_v32  ;;  %749 = vmatmul.mubr.f32.gmra.mrb[18].mxu0 %v627_v26  ;;  %vm613_vm10 = vcmp.gt.f32.partialorder %v583_v31, 0.0  ;;  %v621_v35 = vmul.f32 0.25, %v583_v31 }
 0x259   : > { %v588_v37 = vadd.f32 %v1086_v28, %v1856_v15  ;;  %v1087_v38 = vpop.f32.mrb[8].mxu1  ;;  %v629_v39 = vsel %vm613_vm10, %v583_v31, %v621_v35 }
 0x25a   : > { %v1088_v40 = vpop.f32.mrb[9].mxu1  ;;  %753 = vmatprep.mubr.f32.mxu0 %v629_v39  ;;  %815 = vst [vmem:[%s1768_s15 + $0x38] sm:$0xff] %v629_v39 }
 0x25b   : > { %v1089_v41 = vadd.f32 %v1088_v40, %v1087_v38  ;;  %754 = vmatmul.mubr.f32.gmra.mrb[20].mxu0 %v628_v33  ;;  %vm614_vm11 = vcmp.gt.f32.partialorder %v588_v37, 0.0  ;;  %v622_v42 = vmul.f32 0.25, %v588_v37 }
 0x25d   : > { %v593_v43 = vadd.f32 %v1089_v41, %v1856_v15  ;;  %v1090_v44 = vpop.f32.mrb[10].mxu1  ;;  %v630_v45 = vsel %vm614_vm11, %v588_v37, %v622_v42 }
 0x25e   : > { %v1091_v46 = vpop.f32.mrb[11].mxu1  ;;  %758 = vmatprep.mubr.f32.mxu0 %v630_v45  ;;  %818 = vst [vmem:[%s1768_s15 + $0x50] sm:$0xff] %v630_v45 }
 0x25f   : > { %v1092_v36 = vadd.f32 %v1091_v46, %v1090_v44  ;;  %759 = vmatmul.mubr.f32.gmra.mrb[22].mxu0 %v629_v39  ;;  %vm615_vm12 = vcmp.gt.f32.partialorder %v593_v43, 0.0  ;;  %v623_v47 = vmul.f32 0.25, %v593_v43 }
 0x261   : > { %v598_v48 = vadd.f32 %v1092_v36, %v1856_v15  ;;  %v1093_v49 = vpop.f32.mrb[12].mxu1  ;;  %v631_v50 = vsel %vm615_vm12, %v593_v43, %v623_v47 }
 0x262   : > { %v1094_v51 = vpop.f32.mrb[13].mxu1  ;;  %763 = vmatprep.mubr.f32.mxu1 %v631_v50  ;;  %821 = vst [vmem:[%s1768_s15 + $0x68] sm:$0xff] %v631_v50 }
 0x263   : > { %v1095_v52 = vadd.f32 %v1094_v51, %v1093_v49  ;;  %764 = vmatmul.mubr.f32.vlgmr.msra.gmra.mrb[16].mxu1 %v630_v45  ;;  %vm616_vm13 = vcmp.gt.f32.partialorder %v598_v48, 0.0  ;;  %v624_v53 = vmul.f32 0.25, %v598_v48 }
 0x265   : > { %v603_v54 = vadd.f32 %v1095_v52, %v1856_v15  ;;  %v1096_v55 = vpop.f32.mrb[14].mxu1  ;;  %v632_v56 = vsel %vm616_vm13, %v598_v48, %v624_v53 }
 0x266   : > { %v1097_v57 = vpop.f32.mrb[15].mxu1  ;;  %768 = vmatprep.mubr.f32.mxu1 %v632_v56  ;;  %824 = vst [vmem:[%s1768_s15 + $0x80] sm:$0xff] %v632_v56 }
 0x267   : > { %v1098_v58 = vadd.f32 %v1097_v57, %v1096_v55  ;;  %769 = vmatmul.mubr.f32.gmra.mrb[18].mxu1 %v631_v50  ;;  %vm617_vm14 = vcmp.gt.f32.partialorder %v603_v54, 0.0  ;;  %v625_v59 = vmul.f32 0.25, %v603_v54 }
 0x269   : > { %v608_v60 = vadd.f32 %v1098_v58, %v1856_v15  ;;  %v633_v61 = vsel %vm617_vm14, %v603_v54, %v625_v59 }
 0x26a   : > { %773 = vmatprep.mubr.f32.mxu1 %v633_v61  ;;  %827 = vst [vmem:[%s1768_s15 + $0x98] sm:$0xff] %v633_v61 }
 0x26b   : > { %v626_v62 = vmul.f32 0.25, %v608_v60  ;;  %774 = vmatmul.mubr.f32.gmra.mrb[20].mxu1 %v632_v56  ;;  %vm618_vm15 = vcmp.gt.f32.partialorder %v608_v60, 0.0 }
 0x26d   : > { %v634_v63 = vsel %vm618_vm15, %v608_v60, %v626_v62 }
 0x26e   : > { %637 = vst [vmem:[#allocation2 + $0x10] sm:$0xff] %v634_v63  ;;  %639 = vst [vmem:[#allocation10 + $0x10] sm:$0xff] %v634_v63  ;;  %778 = vmatprep.mubr.f32.mxu1 %v634_v63 }
 0x26f   : > { %830 = vst [vmem:[%s1768_s15 + $0xb0] sm:$0xff] %v634_v63  ;;  %779 = vmatmul.mubr.f32.gmra.mrb[22].mxu1 %v633_v61 }
 0x270   : > { %1450 = shalt.err (!%p1447_p13)
}
 0x271   : > { %s1451_s9 = scalar_lea.hbm %s1962_s5, 384  ;;  %p1979_p5 = pmov %p1978_p6 }
 0x272   : > { %p1452_p0 = scmp.ne.s32.totalorder %s1962_s5, %s1451_s9  ;;  %p1457_p2 = scmp.lt.u32.totalorder %s1451_s9, %s1962_s5 }
 0x274   : > { %p1453_p11 = pnand %p1452_p0, %p1979_p5 }
 0x276   : > { %p1454_p1 = pneg %p1453_p11 }
 0x278   : > { %p1459_p4 = pnand %p1457_p2, %p1454_p1 }
 0x27a   : > { %1462 = shalt.err (!%p1459_p4)
}
 0x27b   : > { %s1547_s24 = smov 128   ;;  %s1548_s16 = smov 8   ;;  %v978_v3 = vld [vmem:[%s1960_s3 + $0x2] ss:$0 sm:$0xff] }
 0x27c   : > { %p1980_p6 = pmov %p1979_p5  ;;  %s847_s12 = sshll.u32 %s1768_s15, 4  ;;  %s1909_s12 = int_to_ptr.vmem [resolvable:$true] %s847_s12 }
 0x27d   : > { %s833_s10 = scalar_lea.sflag [#allocation5], %s1753_s27  ;;  %s1463_s11 = scalar_lea.vmem %s1909_s12, 3072 }
 0x27e   : > { %1281 = dma.vmem_to_hbm [thread:$0]  (%p1980_p6), %s861_s17, 384, %s1962_s5, [#allocation11], %s1547_s24, %s1547_s24, %s1548_s16  }
 0x27f   : > { %s1268_s17 = smul.u32 3072, %s1603_s22  ;;  %p1464_p9 = scmp.ne.s32.totalorder %s1909_s12, %s1463_s11 }
 0x280   : > { %s1549_s26 = smov [#allocation9]  }
 0x281   : > { %s1907_s6 = scalar_lea.hbm %s1961_s4, %s1268_s17  ;;  %p1465_p12 = pnand %p1464_p9, %p1701_p8 }
 0x282   : > { %s1467_s24 = sshll.u32 %s1549_s26, 4  ;;  %s1468_s24 = int_to_ptr.vmem [resolvable:$false] %s1467_s24 }
 0x283   : > { %p1466_p3 = pneg %p1465_p12  ;;  %s1469_s16 = scalar_lea.vmem %s1468_s24, 6144 }
 0x284   : > { %p1470_p7 = scmp.lt.s32.totalorder %s1909_s12, %s1468_s24  ;;  %p1471_p10 = scmp.lt.s32.totalorder %s1469_s16, %s1463_s11 }
 0x286   : > { %p1472_p13 = por %p1471_p10, %p1470_p7 }
 0x288   : > { %p1473_p0 = pnand %p1472_p13, %p1466_p3 }
 0x326   : > { %v1131_v0 = vpop.f32.mrb[16].mxu0 }
 0x327   : > { %v1132_v1 = vpop.f32.mrb[17].mxu0 }
 0x328   : > { %v1133_v2 = vadd.f32 %v1132_v1, %v1131_v0 }
 0x32a   : > { %v746_v4 = vadd.f32 %v1133_v2, %v978_v3  ;;  %v1134_v5 = vpop.f32.mrb[18].mxu0 }
 0x32b   : > { %v1135_v6 = vpop.f32.mrb[19].mxu0 }
 0x32c   : > { %vm784_vm0 = vcmp.gt.f32.partialorder %v746_v4, 0.0  ;;  %v792_v7 = vmul.f32 0.25, %v746_v4  ;;  %v1136_v8 = vadd.f32 %v1135_v6, %v1134_v5 }
 0x32e   : > { %v800_v9 = vsel %vm784_vm0, %v746_v4, %v792_v7  ;;  %v751_v10 = vadd.f32 %v1136_v8, %v978_v3  ;;  %v1137_v11 = vpop.f32.mrb[20].mxu0 }
 0x32f   : > { %810 = vst [vmem:[%s1768_s15 + $0x10] sm:$0xff] %v800_v9  ;;  %v1138_v12 = vpop.f32.mrb[21].mxu0 }
 0x330   : > { %vm785_vm1 = vcmp.gt.f32.partialorder %v751_v10, 0.0  ;;  %v793_v13 = vmul.f32 0.25, %v751_v10  ;;  %v1139_v14 = vadd.f32 %v1138_v12, %v1137_v11 }
 0x332   : > { %v801_v15 = vsel %vm785_vm1, %v751_v10, %v793_v13  ;;  %v756_v16 = vadd.f32 %v1139_v14, %v978_v3  ;;  %v1140_v17 = vpop.f32.mrb[22].mxu0 }
 0x333   : > { %813 = vst [vmem:[%s1768_s15 + $0x28] sm:$0xff] %v801_v15  ;;  %v1141_v18 = vpop.f32.mrb[23].mxu0 }
 0x334   : > { %vm786_vm2 = vcmp.gt.f32.partialorder %v756_v16, 0.0  ;;  %v794_v19 = vmul.f32 0.25, %v756_v16  ;;  %v1142_v20 = vadd.f32 %v1141_v18, %v1140_v17 }
 0x336   : > { %v802_v21 = vsel %vm786_vm2, %v756_v16, %v794_v19  ;;  %v761_v22 = vadd.f32 %v1142_v20, %v978_v3  ;;  %v1143_v23 = vpop.f32.mrb[16].mxu1 }
 0x337   : > { %816 = vst [vmem:[%s1768_s15 + $0x40] sm:$0xff] %v802_v21  ;;  %v1144_v24 = vpop.f32.mrb[17].mxu1 }
 0x338   : > { %vm787_vm3 = vcmp.gt.f32.partialorder %v761_v22, 0.0  ;;  %v795_v25 = vmul.f32 0.25, %v761_v22  ;;  %v1145_v26 = vadd.f32 %v1144_v24, %v1143_v23 }
 0x33a   : > { %v803_v27 = vsel %vm787_vm3, %v761_v22, %v795_v25  ;;  %v766_v29 = vadd.f32 %v1145_v26, %v978_v3  ;;  %v1146_v30 = vpop.f32.mrb[18].mxu1 }
 0x33b   : > { %819 = vst [vmem:[%s1768_s15 + $0x58] sm:$0xff] %v803_v27  ;;  %v1147_v31 = vpop.f32.mrb[19].mxu1 }
 0x33c   : > { %vm788_vm4 = vcmp.gt.f32.partialorder %v766_v29, 0.0  ;;  %v796_v32 = vmul.f32 0.25, %v766_v29  ;;  %v1148_v33 = vadd.f32 %v1147_v31, %v1146_v30 }
 0x33e   : > { %v804_v34 = vsel %vm788_vm4, %v766_v29, %v796_v32  ;;  %v771_v28 = vadd.f32 %v1148_v33, %v978_v3  ;;  %v1149_v35 = vpop.f32.mrb[20].mxu1 }
 0x33f   : > { %822 = vst [vmem:[%s1768_s15 + $0x70] sm:$0xff] %v804_v34  ;;  %v1150_v37 = vpop.f32.mrb[21].mxu1 }
 0x340   : > { %vm789_vm5 = vcmp.gt.f32.partialorder %v771_v28, 0.0  ;;  %v797_v38 = vmul.f32 0.25, %v771_v28  ;;  %v1151_v39 = vadd.f32 %v1150_v37, %v1149_v35 }
 0x342   : > { %v805_v40 = vsel %vm789_vm5, %v771_v28, %v797_v38  ;;  %v776_v41 = vadd.f32 %v1151_v39, %v978_v3  ;;  %v1152_v42 = vpop.f32.mrb[22].mxu1 }
 0x343   : > { %825 = vst [vmem:[%s1768_s15 + $0x88] sm:$0xff] %v805_v40  ;;  %v1153_v43 = vpop.f32.mrb[23].mxu1 }
 0x344   : > { %vm790_vm6 = vcmp.gt.f32.partialorder %v776_v41, 0.0  ;;  %v798_v44 = vmul.f32 0.25, %v776_v41  ;;  %v1154_v45 = vadd.f32 %v1153_v43, %v1152_v42 }
 0x346   : > { %v806_v46 = vsel %vm790_vm6, %v776_v41, %v798_v44  ;;  %v781_v36 = vadd.f32 %v1154_v45, %v978_v3 }
 0x347   : > { %828 = vst [vmem:[%s1768_s15 + $0xa0] sm:$0xff] %v806_v46 }
 0x348   : > { %vm791_vm7 = vcmp.gt.f32.partialorder %v781_v36, 0.0  ;;  %v799_v47 = vmul.f32 0.25, %v781_v36 }
 0x34a   : > { %v807_v48 = vsel %vm791_vm7, %v781_v36, %v799_v47 }
 0x34b   : > { %831 = vst [vmem:[%s1768_s15 + $0xb8] sm:$0xff] %v807_v48 }
 0x34c   : > { %1476 = shalt.err (!%p1473_p0)
}
 0x34d   : > { %s1477_s15 = scalar_lea.hbm %s1907_s6, 3072  ;;  %s1481_s14 = scalar_lea.hbm %s1961_s4, 12288 }
 0x34e   : > { %p1478_p5 = scmp.ne.s32.totalorder %s1907_s6, %s1477_s15  ;;  %p1482_p2 = scmp.lt.u32.totalorder %s1907_s6, %s1961_s4 }
 0x34f   : > { %p1483_p4 = scmp.lt.u32.totalorder %s1481_s14, %s1477_s15  ;;  %p1485_p9 = scmp.lt.u32.totalorder %s1477_s15, %s1907_s6 }
 0x350   : > { %p1479_p11 = pnand %p1478_p5, %p1701_p8 }
 0x351   : > { %p1484_p6 = por %p1483_p4, %p1482_p2 }
 0x352   : > { %p1480_p1 = pneg %p1479_p11 }
 0x353   : > { %p1486_p12 = por %p1485_p9, %p1484_p6 }
 0x355   : > { %p1487_p3 = pnand %p1486_p12, %p1480_p1 }
 0x357   : > { %1490 = shalt.err (!%p1487_p3)
}
 0x358   : > { %s1550_s30 = smov 384   ;;  %s1551_s9 = smov 24  }
 0x359   : > { %1279 = dma.vmem_to_hbm [thread:$0]  (%p1701_p8), %s1909_s12, 3072, %s1907_s6, %s833_s10, %s1550_s30, %s1550_s30, %s1551_s9  }
 0x35a   : > { %p1981_p7 = scmp.eq.s32.totalorder %s1603_s22, 3 }
 0x35c   : > { %1516 = dma.done.wait (%p1981_p7), [#allocation11], 384   ;;  %p1982_p10 = pmov %p1981_p7 }
 0x35e   : > { %1518 = vsyncadd (%p1982_p10), [#allocation11], 4294966912 }
 0x35f PF: > { %p1307_p13 = scmp.ge.s32.totalorder %s1537_s21, 2  ;;  %s879_s11 = sand.u32 1, %s1525_s18  }
 0x360   : > { %p1983_p0 = scmp.ne.s32.totalorder %s1967_s25, 0  ;;  %s880_s26 = scalar_lea.sflag [#allocation5], %s879_s11 }
 0x362   : > { %p1297_p5 = pnand %p1307_p13, %p1983_p0 }
 0x364   : > { %1520 = dma.done.wait (!%p1297_p5), %s880_s26, 3072  }
 0x365   : > { %1522 = vsyncadd (!%p1297_p5), %s880_s26, 4294964224  ;;  %p21_p8 = scmp.ge.s32.totalorder %s1688_s23, 6   ;;  %s1984_s18 = smov %s1529_s19 }
 0x366   : > { %s1985_s19 = smov %s1533_s20  ;;  %s1986_s20 = smov %s1697_s7 }
 0x367   : > { %s1987_s21 = smov %s1688_s23  ;;  %23 = sbr.rel (!%p21_p8) target bundleno = 7 (0x7), region = 105 }
 0x36e   :  { %885 = vsyncpa [#allocation4], 1 }
 0x36f   :  { %887 = vsyncpa [#allocation4 + $0x1], 1 }
 0x370   :  { %888 = vsyncpa [#allocation7], 1 }
 0x371   :  { %889 = vsyncpa [#allocation5], 1 }
 0x372   :  { %891 = vsyncpa [#allocation5 + $0x1], 1 }
 0x373   :  { %892 = vsyncpa [#allocation11], 1 }

</bundles_post_ra>
